<compile_context>
chip_gen: v5e
topology: v5e:2x2
jax: 0.10.0
libtpu: 0.0.40
codegen_flags: <defaults>
</compile_context>

<pallas_src>
import functools

import jax
import jax.numpy as jnp
from jax import lax
from jax.experimental import pallas as pl
from jax.experimental.pallas import tpu as pltpu

# ------------------------- deterministic "config" -------------------------
IMAGE_W = 64
IMAGE_H = 64
BACKGROUND_COLOR = (0.1, 0.2, 0.3)
TEMPERATURE = 0.1          # soft-sort temperature (monotone -> same ordering as hard sort)
SIGMA = 1.0                # soft-rasterization falloff
SOFT_RASTERIZATION = True
USE_SOFT_SORTING = True
DEPTH_SORTING = "back_to_front"

# rows of the packed per-voxel parameter table [N_ROWS, Npad]
ROW_SX, ROW_SY, ROW_DEPTH, ROW_HS, ROW_VA, ROW_VALID, ROW_R, ROW_G, ROW_B = range(9)
N_ROWS = 9


# ------------------------- projection + culling kernel -------------------------
def _project_kernel(pos_ref, size_ref, dens_ref, col_ref, cam_ref, intr_ref,
                    params_ref, *, width, height):
    # pos_ref: [3, G, 128], size_ref/dens_ref: [G, 128], col_ref: [3, G, 128]  (VMEM)
    # cam_ref: [4, 4] SMEM, intr_ref: [3, 3] SMEM, params_ref: [N_ROWS, G, 128] VMEM out
    px = pos_ref[0, :, :]
    py = pos_ref[1, :, :]
    pz = pos_ref[2, :, :]

    # positions_hom @ camera_matrix.T  (row k) == px*c[k,0] + py*c[k,1] + pz*c[k,2] + c[k,3]
    def cam_row(k):
        return (px * cam_ref[k, 0] + py * cam_ref[k, 1]
                + pz * cam_ref[k, 2] + cam_ref[k, 3])

    cxc, cyc, czc, cwc = cam_row(0), cam_row(1), cam_row(2), cam_row(3)
    inv_w = 1.0 / cwc
    cxc = cxc * inv_w
    cyc = cyc * inv_w
    czc = czc * inv_w
    depth = czc

    # camera_positions @ intrinsics.T
    def intr_row(k):
        return cxc * intr_ref[k, 0] + cyc * intr_ref[k, 1] + czc * intr_ref[k, 2]

    sxh, syh, szh = intr_row(0), intr_row(1), intr_row(2)
    inv_z = 1.0 / szh
    sx = sxh * inv_z
    sy = syh * inv_z

    sizes = size_ref[...]
    screen_size = sizes * intr_ref[0, 0] / jnp.maximum(depth, 0.1)
    half_size = screen_size * 0.5

    # numerically-stable softplus hand-rolled from exp/log (guaranteed to lower)
    dens = dens_ref[...]
    sp = jnp.maximum(dens, 0.0) + jnp.log(1.0 + jnp.exp(-jnp.abs(dens)))
    voxel_alpha = jnp.clip(1.0 - jnp.exp(-sp * sizes), 0.0, 1.0)

    valid = ((depth > 0.1) & (depth < 100.0)
             & (sx + screen_size >= 0.0) & (sx - screen_size < float(width))
             & (sy + screen_size >= 0.0) & (sy - screen_size < float(height)))

    params_ref[ROW_SX, :, :] = sx
    params_ref[ROW_SY, :, :] = sy
    params_ref[ROW_DEPTH, :, :] = depth
    params_ref[ROW_HS, :, :] = half_size
    params_ref[ROW_VA, :, :] = voxel_alpha
    params_ref[ROW_VALID, :, :] = valid.astype(jnp.float32)
    params_ref[ROW_R, :, :] = col_ref[0, :, :]
    params_ref[ROW_G, :, :] = col_ref[1, :, :]
    params_ref[ROW_B, :, :] = col_ref[2, :, :]


def project_voxels(positions, sizes, densities, colors, camera_matrix, intrinsics,
                   viewport_size):
    width, height = viewport_size
    n = positions.shape[0]
    n_pad = ((n + 127) // 128) * 128
    g = n_pad // 128

    def to_planes(x_t):  # [C, n] -> [C, G, 128]
        c = x_t.shape[0]
        x_t = jnp.pad(x_t, ((0, 0), (0, n_pad - x_t.shape[1])))
        return x_t.reshape(c, g, 128)

    pos_p = to_planes(positions.T.astype(jnp.float32))                 # [3, G, 128]
    col_p = to_planes(colors.T.astype(jnp.float32))                    # [3, G, 128]
    size_p = to_planes(sizes.reshape(1, n).astype(jnp.float32))[0]     # [G, 128]
    dens_p = to_planes(densities.reshape(1, n).astype(jnp.float32))[0] # [G, 128]

    kernel = functools.partial(_project_kernel, width=width, height=height)
    params = pl.pallas_call(
        kernel,
        out_shape=jax.ShapeDtypeStruct((N_ROWS, g, 128), jnp.float32),
        in_specs=[
            pl.BlockSpec(memory_space=pltpu.MemorySpace.VMEM),
            pl.BlockSpec(memory_space=pltpu.MemorySpace.VMEM),
            pl.BlockSpec(memory_space=pltpu.MemorySpace.VMEM),
            pl.BlockSpec(memory_space=pltpu.MemorySpace.VMEM),
            pl.BlockSpec(memory_space=pltpu.MemorySpace.SMEM),
            pl.BlockSpec(memory_space=pltpu.MemorySpace.SMEM),
        ],
        out_specs=pl.BlockSpec(memory_space=pltpu.MemorySpace.VMEM),
    )(pos_p, size_p, dens_p, col_p,
      camera_matrix.astype(jnp.float32), intrinsics.astype(jnp.float32))
    return params.reshape(N_ROWS, n_pad)


# ------------------------- depth sorting (plain-JAX glue) -------------------------
def sort_voxels(params, n):
    n_pad = params.shape[1]
    depth = params[ROW_DEPTH]
    lane_valid = jnp.arange(n_pad) < n
    valid = (params[ROW_VALID] > 0.5) & lane_valid
    # soft sort: argsort(softmax(depth/T), descending) is identical to a hard depth sort
    # because softmax is strictly monotone; culled/padded voxels are pushed to the end and
    # never read by the raster kernel (its loop bound is num_valid).
    if DEPTH_SORTING == "back_to_front":
        key = jnp.where(valid, depth, -jnp.inf)
        order = jnp.argsort(-key)
    else:  # front_to_back
        key = jnp.where(valid, depth, jnp.inf)
        order = jnp.argsort(key)
    sorted_params = params[:, order]
    num_valid = jnp.sum(valid).astype(jnp.int32).reshape(1)
    return sorted_params, num_valid


# ------------------------- soft rasterization kernel (tiled framebuffer) -------------------------
def _raster_kernel(nvalid_ref, params_ref, rgb_ref, depth_ref, alpha_ref,
                   *, bg, sigma, width, tile_rows, rows_per_tile, n_pad):
    # nvalid_ref: [1] SMEM int32
    # params_ref: [N_ROWS * n_pad] SMEM f32 (sorted, valid-first, row-major [row, voxel])
    # rgb_ref: [3, tile_rows, 128] VMEM tile; depth_ref/alpha_ref: [tile_rows, 128] VMEM tile
    L = 128
    t = pl.program_id(0)

    # per-tile pixel coordinates (float math only; exact for coords < 2^24), hoisted
    sub = lax.broadcasted_iota(jnp.int32, (tile_rows, L), 0).astype(jnp.float32)
    lane = lax.broadcasted_iota(jnp.int32, (tile_rows, L), 1).astype(jnp.float32)
    flat_local = sub * float(L) + lane
    ys_local = jnp.floor(flat_local / float(width))
    xs = flat_local - ys_local * float(width)

    y_min_f = (t * rows_per_tile).astype(jnp.float32)      # first image row of this tile
    y_max_f = y_min_f + float(rows_per_tile - 1)            # last image row of this tile
    ys = ys_local + y_min_f

    neg_inv_2s2 = -1.0 / (2.0 * sigma * sigma)

    r0 = jnp.full((tile_rows, L), bg[0], jnp.float32)
    g0 = jnp.full((tile_rows, L), bg[1], jnp.float32)
    b0 = jnp.full((tile_rows, L), bg[2], jnp.float32)
    dep0 = jnp.full((tile_rows, L), 100.0, jnp.float32)
    alp0 = jnp.zeros((tile_rows, L), jnp.float32)

    def body(i, carry):
        sx = params_ref[ROW_SX * n_pad + i]
        sy = params_ref[ROW_SY * n_pad + i]
        d = params_ref[ROW_DEPTH * n_pad + i]
        hs = params_ref[ROW_HS * n_pad + i]
        va = params_ref[ROW_VA * n_pad + i]
        cr = params_ref[ROW_R * n_pad + i]
        cg = params_ref[ROW_G * n_pad + i]
        cb = params_ref[ROW_B * n_pad + i]

        # per-tile scalar bbox cull: tile covers image rows [y_min, y_max]; a voxel whose
        # footprint (sy +/- hs) misses that band cannot touch any pixel -> skip the splat.
        hit = jnp.logical_and(sy + hs >= y_min_f, sy - hs <= y_max_f)

        def splat(c):
            r, g, b, dep, alp = c
            dx = xs - sx
            dy = ys - sy
            d2 = dx * dx + dy * dy
            inside = d2 <= hs * hs                       # dist <= half_size (hs >= 0)
            dist = jnp.sqrt(d2)                          # reference uses LINEAR distance
            pixel_alpha = va * jnp.exp(dist * neg_inv_2s2)   # already in [0,1] -> no clamp
            bf = jnp.where(inside, pixel_alpha * (1.0 - alp), 0.0)
            omb = 1.0 - bf
            return (r * omb + cr * bf,
                    g * omb + cg * bf,
                    b * omb + cb * bf,
                    dep * omb + d * bf,                  # identity when bf == 0 (d finite)
                    alp + bf)

        return lax.cond(hit, splat, lambda c: c, carry)

    nv = nvalid_ref[0]
    r, g, b, dep, alp = lax.fori_loop(0, nv, body, (r0, g0, b0, dep0, alp0))

    rgb_ref[0, :, :] = r
    rgb_ref[1, :, :] = g
    rgb_ref[2, :, :] = b
    depth_ref[...] = dep
    alpha_ref[...] = alp


def rasterize(sorted_params_flat, num_valid, viewport_size):
    width, height = viewport_size
    n_pix = width * height
    assert n_pix % 128 == 0, "H*W must be a multiple of 128 for the lane-dense framebuffer"
    R = n_pix // 128
    # tile = (tile_rows, 128) flat pixels; require tiles to cover whole image rows so the
    # per-tile cull is a pure y test.  Fallback: one tile covering the whole image.
    tile_rows = 8 if (R % 8 == 0 and (8 * 128) % width == 0) else R
    num_tiles = R // tile_rows
    rows_per_tile = (tile_rows * 128) // width
    n_pad = sorted_params_flat.shape[0] // N_ROWS

    kernel = functools.partial(_raster_kernel, bg=BACKGROUND_COLOR, sigma=SIGMA,
                               width=width, tile_rows=tile_rows,
                               rows_per_tile=rows_per_tile, n_pad=n_pad)

    cost = pl.CostEstimate(
        flops=20 * n_pix * n_pad,
        transcendentals=2 * n_pix * n_pad,
        bytes_accessed=4 * (N_ROWS * n_pad + 5 * n_pix),
    )

    rgb, depth, alpha = pl.pallas_call(
        kernel,
        out_shape=(
            jax.ShapeDtypeStruct((3, R, 128), jnp.float32),
            jax.ShapeDtypeStruct((R, 128), jnp.float32),
            jax.ShapeDtypeStruct((R, 128), jnp.float32),
        ),
        grid=(num_tiles,),
        in_specs=[
            pl.BlockSpec(memory_space=pltpu.MemorySpace.SMEM),   # num_valid
            pl.BlockSpec(memory_space=pltpu.MemorySpace.SMEM),   # flat sorted params
        ],
        out_specs=(
            pl.BlockSpec((3, tile_rows, 128), lambda t: (0, t, 0)),
            pl.BlockSpec((tile_rows, 128), lambda t: (t, 0)),
            pl.BlockSpec((tile_rows, 128), lambda t: (t, 0)),
        ),
        compiler_params=pltpu.CompilerParams(dimension_semantics=("parallel",)),
        cost_estimate=cost,
    )(num_valid, sorted_params_flat)
    return rgb, depth, alpha


# ------------------------- forward wrapper -------------------------
@functools.partial(jax.jit, static_argnames=("viewport_size",))
def differentiable_voxel_rasterizer(voxels, camera_matrix, intrinsics, viewport_size=None):
    if viewport_size is None:
        viewport_size = (IMAGE_W, IMAGE_H)
    width, height = viewport_size
    n = voxels["positions"].shape[0]
    params = project_voxels(voxels["positions"], voxels["sizes"], voxels["densities"],
                            voxels["colors"], camera_matrix, intrinsics, viewport_size)
    sorted_params, num_valid = sort_voxels(params, n)
    params_flat = sorted_params.reshape(-1)              # [N_ROWS * Npad], row-major
    rgb_ld, depth_ld, alpha_ld = rasterize(params_flat, num_valid, viewport_size)
    rgb = jnp.transpose(rgb_ld.reshape(3, height, width), (1, 2, 0))
    depth = depth_ld.reshape(height, width)
    alpha = alpha_ld.reshape(height, width)
    # TODO(synk): PyTorch returns a background-only dict (without 'alpha') when zero voxels
    # survive culling; here the fully-culled path yields the same rgb/depth buffers plus alpha=0.
    return {"rgb": rgb, "depth": depth, "alpha": alpha}


if __name__ == "__main__":
    key = jax.random.PRNGKey(0)
    k1, k2, k3, k4 = jax.random.split(key, 4)
    n = 64

    positions = jnp.concatenate([
        jax.random.uniform(k1, (n, 2), minval=-1.0, maxval=1.0),
        jax.random.uniform(k2, (n, 1), minval=2.0, maxval=5.0),
    ], axis=1).astype(jnp.float32)
    # push a couple of voxels behind / far outside the frustum to exercise culling
    positions = positions.at[0, 2].set(-3.0).at[1, 0].set(50.0)

    sizes = jax.random.uniform(k3, (n,), minval=0.05, maxval=0.25).astype(jnp.float32)
    densities = (jax.random.normal(k4, (n,)) * 2.0).astype(jnp.float32)
    colors = jax.random.uniform(jax.random.PRNGKey(1), (n, 3)).astype(jnp.float32)

    camera_matrix = jnp.eye(4, dtype=jnp.float32)          # world == camera frame
    fx = fy = 64.0
    cx = cy = 32.0
    intrinsics = jnp.array([[fx, 0.0, cx],
                            [0.0, fy, cy],
                            [0.0, 0.0, 1.0]], dtype=jnp.float32)

    voxels = {"positions": positions, "sizes": sizes,
              "densities": densities, "colors": colors}

    out = differentiable_voxel_rasterizer(voxels, camera_matrix, intrinsics)
    jax.block_until_ready(out)

    assert out["rgb"].shape == (IMAGE_H, IMAGE_W, 3)
    assert out["depth"].shape == (IMAGE_H, IMAGE_W)
    assert out["alpha"].shape == (IMAGE_H, IMAGE_W)
    assert bool(jnp.all(jnp.isfinite(out["rgb"])))
    assert bool(jnp.all(jnp.isfinite(out["depth"])))
    assert bool(jnp.all(jnp.isfinite(out["alpha"])))
    print("KERNEL_OK")
</pallas_src>

<mosaic_0001>
module attributes {stable_mosaic.version = 11 : i64} {
  func.func @_project_kernel(%arg0: memref<3x1x128xf32, #tpu.memory_space<vmem>>, %arg1: memref<1x128xf32, #tpu.memory_space<vmem>>, %arg2: memref<1x128xf32, #tpu.memory_space<vmem>>, %arg3: memref<3x1x128xf32, #tpu.memory_space<vmem>>, %arg4: memref<4x4xf32, #tpu.memory_space<smem>>, %arg5: memref<3x3xf32, #tpu.memory_space<smem>>, %arg6: memref<9x1x128xf32, #tpu.memory_space<vmem>>) attributes {dimension_semantics = [], scalar_prefetch = 0 : i64, scratch_operands = 0 : i64, tpu.core_type = #tpu.core_type<tc>} {
    %c0 = arith.constant 0 : index
    %c0_0 = arith.constant 0 : index
    %c0_1 = arith.constant 0 : index
    %0 = vector.load %arg0[%c0, %c0_0, %c0_1] : memref<3x1x128xf32, #tpu.memory_space<vmem>>, vector<1x1x128xf32>
    %1 = vector.shape_cast %0 : vector<1x1x128xf32> to vector<1x128xf32>
    %c1 = arith.constant 1 : index
    %c0_2 = arith.constant 0 : index
    %c0_3 = arith.constant 0 : index
    %2 = vector.load %arg0[%c1, %c0_2, %c0_3] : memref<3x1x128xf32, #tpu.memory_space<vmem>>, vector<1x1x128xf32>
    %3 = vector.shape_cast %2 : vector<1x1x128xf32> to vector<1x128xf32>
    %c2 = arith.constant 2 : index
    %c0_4 = arith.constant 0 : index
    %c0_5 = arith.constant 0 : index
    %4 = vector.load %arg0[%c2, %c0_4, %c0_5] : memref<3x1x128xf32, #tpu.memory_space<vmem>>, vector<1x1x128xf32>
    %5 = vector.shape_cast %4 : vector<1x1x128xf32> to vector<1x128xf32>
    %c0_6 = arith.constant 0 : index
    %c0_7 = arith.constant 0 : index
    %6 = memref.load %arg4[%c0_6, %c0_7] : memref<4x4xf32, #tpu.memory_space<smem>>
    %7 = vector.broadcast %6 : f32 to vector<1x128xf32>
    %8 = arith.mulf %1, %7 : vector<1x128xf32>
    %c0_8 = arith.constant 0 : index
    %c1_9 = arith.constant 1 : index
    %9 = memref.load %arg4[%c0_8, %c1_9] : memref<4x4xf32, #tpu.memory_space<smem>>
    %10 = vector.broadcast %9 : f32 to vector<1x128xf32>
    %11 = arith.mulf %3, %10 : vector<1x128xf32>
    %12 = arith.addf %8, %11 : vector<1x128xf32>
    %c0_10 = arith.constant 0 : index
    %c2_11 = arith.constant 2 : index
    %13 = memref.load %arg4[%c0_10, %c2_11] : memref<4x4xf32, #tpu.memory_space<smem>>
    %14 = vector.broadcast %13 : f32 to vector<1x128xf32>
    %15 = arith.mulf %5, %14 : vector<1x128xf32>
    %16 = arith.addf %12, %15 : vector<1x128xf32>
    %c0_12 = arith.constant 0 : index
    %c3 = arith.constant 3 : index
    %17 = memref.load %arg4[%c0_12, %c3] : memref<4x4xf32, #tpu.memory_space<smem>>
    %18 = vector.broadcast %17 : f32 to vector<1x128xf32>
    %19 = arith.addf %16, %18 : vector<1x128xf32>
    %c1_13 = arith.constant 1 : index
    %c0_14 = arith.constant 0 : index
    %20 = memref.load %arg4[%c1_13, %c0_14] : memref<4x4xf32, #tpu.memory_space<smem>>
    %21 = vector.broadcast %20 : f32 to vector<1x128xf32>
    %22 = arith.mulf %1, %21 : vector<1x128xf32>
    %c1_15 = arith.constant 1 : index
    %c1_16 = arith.constant 1 : index
    %23 = memref.load %arg4[%c1_15, %c1_16] : memref<4x4xf32, #tpu.memory_space<smem>>
    %24 = vector.broadcast %23 : f32 to vector<1x128xf32>
    %25 = arith.mulf %3, %24 : vector<1x128xf32>
    %26 = arith.addf %22, %25 : vector<1x128xf32>
    %c1_17 = arith.constant 1 : index
    %c2_18 = arith.constant 2 : index
    %27 = memref.load %arg4[%c1_17, %c2_18] : memref<4x4xf32, #tpu.memory_space<smem>>
    %28 = vector.broadcast %27 : f32 to vector<1x128xf32>
    %29 = arith.mulf %5, %28 : vector<1x128xf32>
    %30 = arith.addf %26, %29 : vector<1x128xf32>
    %c1_19 = arith.constant 1 : index
    %c3_20 = arith.constant 3 : index
    %31 = memref.load %arg4[%c1_19, %c3_20] : memref<4x4xf32, #tpu.memory_space<smem>>
    %32 = vector.broadcast %31 : f32 to vector<1x128xf32>
    %33 = arith.addf %30, %32 : vector<1x128xf32>
    %c2_21 = arith.constant 2 : index
    %c0_22 = arith.constant 0 : index
    %34 = memref.load %arg4[%c2_21, %c0_22] : memref<4x4xf32, #tpu.memory_space<smem>>
    %35 = vector.broadcast %34 : f32 to vector<1x128xf32>
    %36 = arith.mulf %1, %35 : vector<1x128xf32>
    %c2_23 = arith.constant 2 : index
    %c1_24 = arith.constant 1 : index
    %37 = memref.load %arg4[%c2_23, %c1_24] : memref<4x4xf32, #tpu.memory_space<smem>>
    %38 = vector.broadcast %37 : f32 to vector<1x128xf32>
    %39 = arith.mulf %3, %38 : vector<1x128xf32>
    %40 = arith.addf %36, %39 : vector<1x128xf32>
    %c2_25 = arith.constant 2 : index
    %c2_26 = arith.constant 2 : index
    %41 = memref.load %arg4[%c2_25, %c2_26] : memref<4x4xf32, #tpu.memory_space<smem>>
    %42 = vector.broadcast %41 : f32 to vector<1x128xf32>
    %43 = arith.mulf %5, %42 : vector<1x128xf32>
    %44 = arith.addf %40, %43 : vector<1x128xf32>
    %c2_27 = arith.constant 2 : index
    %c3_28 = arith.constant 3 : index
    %45 = memref.load %arg4[%c2_27, %c3_28] : memref<4x4xf32, #tpu.memory_space<smem>>
    %46 = vector.broadcast %45 : f32 to vector<1x128xf32>
    %47 = arith.addf %44, %46 : vector<1x128xf32>
    %c3_29 = arith.constant 3 : index
    %c0_30 = arith.constant 0 : index
    %48 = memref.load %arg4[%c3_29, %c0_30] : memref<4x4xf32, #tpu.memory_space<smem>>
    %49 = vector.broadcast %48 : f32 to vector<1x128xf32>
    %50 = arith.mulf %1, %49 : vector<1x128xf32>
    %c3_31 = arith.constant 3 : index
    %c1_32 = arith.constant 1 : index
    %51 = memref.load %arg4[%c3_31, %c1_32] : memref<4x4xf32, #tpu.memory_space<smem>>
    %52 = vector.broadcast %51 : f32 to vector<1x128xf32>
    %53 = arith.mulf %3, %52 : vector<1x128xf32>
    %54 = arith.addf %50, %53 : vector<1x128xf32>
    %c3_33 = arith.constant 3 : index
    %c2_34 = arith.constant 2 : index
    %55 = memref.load %arg4[%c3_33, %c2_34] : memref<4x4xf32, #tpu.memory_space<smem>>
    %56 = vector.broadcast %55 : f32 to vector<1x128xf32>
    %57 = arith.mulf %5, %56 : vector<1x128xf32>
    %58 = arith.addf %54, %57 : vector<1x128xf32>
    %c3_35 = arith.constant 3 : index
    %c3_36 = arith.constant 3 : index
    %59 = memref.load %arg4[%c3_35, %c3_36] : memref<4x4xf32, #tpu.memory_space<smem>>
    %60 = vector.broadcast %59 : f32 to vector<1x128xf32>
    %61 = arith.addf %58, %60 : vector<1x128xf32>
    %cst = arith.constant 1.000000e+00 : f32
    %62 = vector.broadcast %cst : f32 to vector<1x128xf32>
    %63 = arith.divf %62, %61 : vector<1x128xf32>
    %64 = arith.mulf %19, %63 : vector<1x128xf32>
    %65 = arith.mulf %33, %63 : vector<1x128xf32>
    %66 = arith.mulf %47, %63 : vector<1x128xf32>
    %c0_37 = arith.constant 0 : index
    %c0_38 = arith.constant 0 : index
    %67 = memref.load %arg5[%c0_37, %c0_38] : memref<3x3xf32, #tpu.memory_space<smem>>
    %68 = vector.broadcast %67 : f32 to vector<1x128xf32>
    %69 = arith.mulf %64, %68 : vector<1x128xf32>
    %c0_39 = arith.constant 0 : index
    %c1_40 = arith.constant 1 : index
    %70 = memref.load %arg5[%c0_39, %c1_40] : memref<3x3xf32, #tpu.memory_space<smem>>
    %71 = vector.broadcast %70 : f32 to vector<1x128xf32>
    %72 = arith.mulf %65, %71 : vector<1x128xf32>
    %73 = arith.addf %69, %72 : vector<1x128xf32>
    %c0_41 = arith.constant 0 : index
    %c2_42 = arith.constant 2 : index
    %74 = memref.load %arg5[%c0_41, %c2_42] : memref<3x3xf32, #tpu.memory_space<smem>>
    %75 = vector.broadcast %74 : f32 to vector<1x128xf32>
    %76 = arith.mulf %66, %75 : vector<1x128xf32>
    %77 = arith.addf %73, %76 : vector<1x128xf32>
    %c1_43 = arith.constant 1 : index
    %c0_44 = arith.constant 0 : index
    %78 = memref.load %arg5[%c1_43, %c0_44] : memref<3x3xf32, #tpu.memory_space<smem>>
    %79 = vector.broadcast %78 : f32 to vector<1x128xf32>
    %80 = arith.mulf %64, %79 : vector<1x128xf32>
    %c1_45 = arith.constant 1 : index
    %c1_46 = arith.constant 1 : index
    %81 = memref.load %arg5[%c1_45, %c1_46] : memref<3x3xf32, #tpu.memory_space<smem>>
    %82 = vector.broadcast %81 : f32 to vector<1x128xf32>
    %83 = arith.mulf %65, %82 : vector<1x128xf32>
    %84 = arith.addf %80, %83 : vector<1x128xf32>
    %c1_47 = arith.constant 1 : index
    %c2_48 = arith.constant 2 : index
    %85 = memref.load %arg5[%c1_47, %c2_48] : memref<3x3xf32, #tpu.memory_space<smem>>
    %86 = vector.broadcast %85 : f32 to vector<1x128xf32>
    %87 = arith.mulf %66, %86 : vector<1x128xf32>
    %88 = arith.addf %84, %87 : vector<1x128xf32>
    %c2_49 = arith.constant 2 : index
    %c0_50 = arith.constant 0 : index
    %89 = memref.load %arg5[%c2_49, %c0_50] : memref<3x3xf32, #tpu.memory_space<smem>>
    %90 = vector.broadcast %89 : f32 to vector<1x128xf32>
    %91 = arith.mulf %64, %90 : vector<1x128xf32>
    %c2_51 = arith.constant 2 : index
    %c1_52 = arith.constant 1 : index
    %92 = memref.load %arg5[%c2_51, %c1_52] : memref<3x3xf32, #tpu.memory_space<smem>>
    %93 = vector.broadcast %92 : f32 to vector<1x128xf32>
    %94 = arith.mulf %65, %93 : vector<1x128xf32>
    %95 = arith.addf %91, %94 : vector<1x128xf32>
    %c2_53 = arith.constant 2 : index
    %c2_54 = arith.constant 2 : index
    %96 = memref.load %arg5[%c2_53, %c2_54] : memref<3x3xf32, #tpu.memory_space<smem>>
    %97 = vector.broadcast %96 : f32 to vector<1x128xf32>
    %98 = arith.mulf %66, %97 : vector<1x128xf32>
    %99 = arith.addf %95, %98 : vector<1x128xf32>
    %cst_55 = arith.constant 1.000000e+00 : f32
    %100 = vector.broadcast %cst_55 : f32 to vector<1x128xf32>
    %101 = arith.divf %100, %99 : vector<1x128xf32>
    %102 = arith.mulf %77, %101 : vector<1x128xf32>
    %103 = arith.mulf %88, %101 : vector<1x128xf32>
    %c0_56 = arith.constant 0 : index
    %c0_57 = arith.constant 0 : index
    %104 = vector.load %arg1[%c0_56, %c0_57] : memref<1x128xf32, #tpu.memory_space<vmem>>, vector<1x128xf32>
    %c0_58 = arith.constant 0 : index
    %c0_59 = arith.constant 0 : index
    %105 = memref.load %arg5[%c0_58, %c0_59] : memref<3x3xf32, #tpu.memory_space<smem>>
    %106 = vector.broadcast %105 : f32 to vector<1x128xf32>
    %107 = arith.mulf %104, %106 : vector<1x128xf32>
    %cst_60 = arith.constant 1.000000e-01 : f32
    %108 = vector.broadcast %cst_60 : f32 to vector<1x128xf32>
    %109 = arith.maximumf %66, %108 : vector<1x128xf32>
    %110 = arith.divf %107, %109 : vector<1x128xf32>
    %cst_61 = arith.constant 5.000000e-01 : f32
    %111 = vector.broadcast %cst_61 : f32 to vector<1x128xf32>
    %112 = arith.mulf %110, %111 : vector<1x128xf32>
    %c0_62 = arith.constant 0 : index
    %c0_63 = arith.constant 0 : index
    %113 = vector.load %arg2[%c0_62, %c0_63] : memref<1x128xf32, #tpu.memory_space<vmem>>, vector<1x128xf32>
    %cst_64 = arith.constant 0.000000e+00 : f32
    %114 = vector.broadcast %cst_64 : f32 to vector<1x128xf32>
    %115 = arith.maximumf %113, %114 : vector<1x128xf32>
    %116 = math.absf %113 : vector<1x128xf32>
    %cst_65 = arith.constant 0.000000e+00 : f32
    %117 = vector.broadcast %cst_65 : f32 to vector<1x128xf32>
    %118 = arith.subf %117, %116 : vector<1x128xf32>
    %119 = math.exp %118 : vector<1x128xf32>
    %cst_66 = arith.constant 1.000000e+00 : f32
    %120 = vector.broadcast %cst_66 : f32 to vector<1x128xf32>
    %121 = arith.addf %120, %119 : vector<1x128xf32>
    %122 = math.log %121 : vector<1x128xf32>
    %123 = arith.addf %115, %122 : vector<1x128xf32>
    %cst_67 = arith.constant 0.000000e+00 : f32
    %124 = vector.broadcast %cst_67 : f32 to vector<1x128xf32>
    %125 = arith.subf %124, %123 : vector<1x128xf32>
    %126 = arith.mulf %125, %104 : vector<1x128xf32>
    %127 = math.exp %126 : vector<1x128xf32>
    %cst_68 = arith.constant 1.000000e+00 : f32
    %128 = vector.broadcast %cst_68 : f32 to vector<1x128xf32>
    %129 = arith.subf %128, %127 : vector<1x128xf32>
    %cst_69 = arith.constant 0.000000e+00 : f32
    %cst_70 = arith.constant 1.000000e+00 : f32
    %130 = vector.broadcast %cst_69 : f32 to vector<1x128xf32>
    %131 = arith.maximumf %130, %129 : vector<1x128xf32>
    %132 = vector.broadcast %cst_70 : f32 to vector<1x128xf32>
    %133 = arith.minimumf %132, %131 : vector<1x128xf32>
    %cst_71 = arith.constant 1.000000e-01 : f32
    %134 = vector.broadcast %cst_71 : f32 to vector<1x128xf32>
    %135 = arith.cmpf ogt, %66, %134 : vector<1x128xf32>
    %cst_72 = arith.constant 1.000000e+02 : f32
    %136 = vector.broadcast %cst_72 : f32 to vector<1x128xf32>
    %137 = arith.cmpf olt, %66, %136 : vector<1x128xf32>
    %138 = arith.andi %135, %137 : vector<1x128xi1>
    %139 = arith.addf %102, %110 : vector<1x128xf32>
    %cst_73 = arith.constant 0.000000e+00 : f32
    %140 = vector.broadcast %cst_73 : f32 to vector<1x128xf32>
    %141 = arith.cmpf oge, %139, %140 : vector<1x128xf32>
    %142 = arith.andi %138, %141 : vector<1x128xi1>
    %143 = arith.subf %102, %110 : vector<1x128xf32>
    %cst_74 = arith.constant 6.400000e+01 : f32
    %144 = vector.broadcast %cst_74 : f32 to vector<1x128xf32>
    %145 = arith.cmpf olt, %143, %144 : vector<1x128xf32>
    %146 = arith.andi %142, %145 : vector<1x128xi1>
    %147 = arith.addf %103, %110 : vector<1x128xf32>
    %cst_75 = arith.constant 0.000000e+00 : f32
    %148 = vector.broadcast %cst_75 : f32 to vector<1x128xf32>
    %149 = arith.cmpf oge, %147, %148 : vector<1x128xf32>
    %150 = arith.andi %146, %149 : vector<1x128xi1>
    %151 = arith.subf %103, %110 : vector<1x128xf32>
    %cst_76 = arith.constant 6.400000e+01 : f32
    %152 = vector.broadcast %cst_76 : f32 to vector<1x128xf32>
    %153 = arith.cmpf olt, %151, %152 : vector<1x128xf32>
    %154 = arith.andi %150, %153 : vector<1x128xi1>
    %c0_77 = arith.constant 0 : index
    %c0_78 = arith.constant 0 : index
    %c0_79 = arith.constant 0 : index
    %155 = vector.load %arg6[%c0_77, %c0_78, %c0_79] : memref<9x1x128xf32, #tpu.memory_space<vmem>>, vector<1x1x128xf32>
    %156 = vector.shape_cast %155 : vector<1x1x128xf32> to vector<1x128xf32>
    %157 = vector.shape_cast %102 : vector<1x128xf32> to vector<1x1x128xf32>
    tpu.vector_store %arg6[%c0_77, %c0_78, %c0_79], %157 {strides = array<i32>} : memref<9x1x128xf32, #tpu.memory_space<vmem>>, vector<1x1x128xf32>,
    %c1_80 = arith.constant 1 : index
    %c0_81 = arith.constant 0 : index
    %c0_82 = arith.constant 0 : index
    %158 = vector.load %arg6[%c1_80, %c0_81, %c0_82] : memref<9x1x128xf32, #tpu.memory_space<vmem>>, vector<1x1x128xf32>
    %159 = vector.shape_cast %158 : vector<1x1x128xf32> to vector<1x128xf32>
    %160 = vector.shape_cast %103 : vector<1x128xf32> to vector<1x1x128xf32>
    tpu.vector_store %arg6[%c1_80, %c0_81, %c0_82], %160 {strides = array<i32>} : memref<9x1x128xf32, #tpu.memory_space<vmem>>, vector<1x1x128xf32>,
    %c2_83 = arith.constant 2 : index
    %c0_84 = arith.constant 0 : index
    %c0_85 = arith.constant 0 : index
    %161 = vector.load %arg6[%c2_83, %c0_84, %c0_85] : memref<9x1x128xf32, #tpu.memory_space<vmem>>, vector<1x1x128xf32>
    %162 = vector.shape_cast %161 : vector<1x1x128xf32> to vector<1x128xf32>
    %163 = vector.shape_cast %66 : vector<1x128xf32> to vector<1x1x128xf32>
    tpu.vector_store %arg6[%c2_83, %c0_84, %c0_85], %163 {strides = array<i32>} : memref<9x1x128xf32, #tpu.memory_space<vmem>>, vector<1x1x128xf32>,
    %c3_86 = arith.constant 3 : index
    %c0_87 = arith.constant 0 : index
    %c0_88 = arith.constant 0 : index
    %164 = vector.load %arg6[%c3_86, %c0_87, %c0_88] : memref<9x1x128xf32, #tpu.memory_space<vmem>>, vector<1x1x128xf32>
    %165 = vector.shape_cast %164 : vector<1x1x128xf32> to vector<1x128xf32>
    %166 = vector.shape_cast %112 : vector<1x128xf32> to vector<1x1x128xf32>
    tpu.vector_store %arg6[%c3_86, %c0_87, %c0_88], %166 {strides = array<i32>} : memref<9x1x128xf32, #tpu.memory_space<vmem>>, vector<1x1x128xf32>,
    %c4 = arith.constant 4 : index
    %c0_89 = arith.constant 0 : index
    %c0_90 = arith.constant 0 : index
    %167 = vector.load %arg6[%c4, %c0_89, %c0_90] : memref<9x1x128xf32, #tpu.memory_space<vmem>>, vector<1x1x128xf32>
    %168 = vector.shape_cast %167 : vector<1x1x128xf32> to vector<1x128xf32>
    %169 = vector.shape_cast %133 : vector<1x128xf32> to vector<1x1x128xf32>
    tpu.vector_store %arg6[%c4, %c0_89, %c0_90], %169 {strides = array<i32>} : memref<9x1x128xf32, #tpu.memory_space<vmem>>, vector<1x1x128xf32>,
    %170 = arith.extui %154 : vector<1x128xi1> to vector<1x128xi32>
    %171 = arith.sitofp %170 : vector<1x128xi32> to vector<1x128xf32>
    %c5 = arith.constant 5 : index
    %c0_91 = arith.constant 0 : index
    %c0_92 = arith.constant 0 : index
    %172 = vector.load %arg6[%c5, %c0_91, %c0_92] : memref<9x1x128xf32, #tpu.memory_space<vmem>>, vector<1x1x128xf32>
    %173 = vector.shape_cast %172 : vector<1x1x128xf32> to vector<1x128xf32>
    %174 = vector.shape_cast %171 : vector<1x128xf32> to vector<1x1x128xf32>
    tpu.vector_store %arg6[%c5, %c0_91, %c0_92], %174 {strides = array<i32>} : memref<9x1x128xf32, #tpu.memory_space<vmem>>, vector<1x1x128xf32>,
    %c0_93 = arith.constant 0 : index
    %c0_94 = arith.constant 0 : index
    %c0_95 = arith.constant 0 : index
    %175 = vector.load %arg3[%c0_93, %c0_94, %c0_95] : memref<3x1x128xf32, #tpu.memory_space<vmem>>, vector<1x1x128xf32>
    %176 = vector.shape_cast %175 : vector<1x1x128xf32> to vector<1x128xf32>
    %c6 = arith.constant 6 : index
    %c0_96 = arith.constant 0 : index
    %c0_97 = arith.constant 0 : index
    %177 = vector.load %arg6[%c6, %c0_96, %c0_97] : memref<9x1x128xf32, #tpu.memory_space<vmem>>, vector<1x1x128xf32>
    %178 = vector.shape_cast %177 : vector<1x1x128xf32> to vector<1x128xf32>
    %179 = vector.shape_cast %176 : vector<1x128xf32> to vector<1x1x128xf32>
    tpu.vector_store %arg6[%c6, %c0_96, %c0_97], %179 {strides = array<i32>} : memref<9x1x128xf32, #tpu.memory_space<vmem>>, vector<1x1x128xf32>,
    %c1_98 = arith.constant 1 : index
    %c0_99 = arith.constant 0 : index
    %c0_100 = arith.constant 0 : index
    %180 = vector.load %arg3[%c1_98, %c0_99, %c0_100] : memref<3x1x128xf32, #tpu.memory_space<vmem>>, vector<1x1x128xf32>
    %181 = vector.shape_cast %180 : vector<1x1x128xf32> to vector<1x128xf32>
    %c7 = arith.constant 7 : index
    %c0_101 = arith.constant 0 : index
    %c0_102 = arith.constant 0 : index
    %182 = vector.load %arg6[%c7, %c0_101, %c0_102] : memref<9x1x128xf32, #tpu.memory_space<vmem>>, vector<1x1x128xf32>
    %183 = vector.shape_cast %182 : vector<1x1x128xf32> to vector<1x128xf32>
    %184 = vector.shape_cast %181 : vector<1x128xf32> to vector<1x1x128xf32>
    tpu.vector_store %arg6[%c7, %c0_101, %c0_102], %184 {strides = array<i32>} : memref<9x1x128xf32, #tpu.memory_space<vmem>>, vector<1x1x128xf32>,
    %c2_103 = arith.constant 2 : index
    %c0_104 = arith.constant 0 : index
    %c0_105 = arith.constant 0 : index
    %185 = vector.load %arg3[%c2_103, %c0_104, %c0_105] : memref<3x1x128xf32, #tpu.memory_space<vmem>>, vector<1x1x128xf32>
    %186 = vector.shape_cast %185 : vector<1x1x128xf32> to vector<1x128xf32>
    %c8 = arith.constant 8 : index
    %c0_106 = arith.constant 0 : index
    %c0_107 = arith.constant 0 : index
    %187 = vector.load %arg6[%c8, %c0_106, %c0_107] : memref<9x1x128xf32, #tpu.memory_space<vmem>>, vector<1x1x128xf32>
    %188 = vector.shape_cast %187 : vector<1x1x128xf32> to vector<1x128xf32>
    %189 = vector.shape_cast %186 : vector<1x128xf32> to vector<1x1x128xf32>
    tpu.vector_store %arg6[%c8, %c0_106, %c0_107], %189 {strides = array<i32>} : memref<9x1x128xf32, #tpu.memory_space<vmem>>, vector<1x1x128xf32>,
    return
  }
}

module attributes {stable_mosaic.version = 11 : i64} {
  func.func @_raster_kernel(%arg0: i32, %arg1: memref<1xi32, #tpu.memory_space<smem>>, %arg2: memref<1152xf32, #tpu.memory_space<smem>>, %arg3: memref<3x8x128xf32, #tpu.memory_space<vmem>>, %arg4: memref<8x128xf32, #tpu.memory_space<vmem>>, %arg5: memref<8x128xf32, #tpu.memory_space<vmem>>) attributes {dimension_semantics = [#tpu.dimension_semantics<parallel>], iteration_bounds = array<i64: 4>, scalar_prefetch = 0 : i64, scratch_operands = 0 : i64, tpu.core_type = #tpu.core_type<tc>, window_params = [{transform_indices = @transform_0, window_bounds = array<i64: 1>}, {transform_indices = @transform_1, window_bounds = array<i64: 1152>}, {transform_indices = @transform_2, window_bounds = array<i64: 3, 8, 128>}, {transform_indices = @transform_3, window_bounds = array<i64: 8, 128>}, {transform_indices = @transform_4, window_bounds = array<i64: 8, 128>}]} {
    %0 = tpu.iota {dimensions = array<i32: 0>} : vector<8x128xi32>
    %1 = arith.sitofp %0 : vector<8x128xi32> to vector<8x128xf32>
    %2 = tpu.iota {dimensions = array<i32: 1>} : vector<8x128xi32>
    %3 = arith.sitofp %2 : vector<8x128xi32> to vector<8x128xf32>
    %cst = arith.constant 1.280000e+02 : f32
    %4 = vector.broadcast %cst : f32 to vector<8x128xf32>
    %5 = arith.mulf %1, %4 : vector<8x128xf32>
    %6 = arith.addf %5, %3 : vector<8x128xf32>
    %cst_0 = arith.constant 6.400000e+01 : f32
    %7 = vector.broadcast %cst_0 : f32 to vector<8x128xf32>
    %8 = arith.divf %6, %7 : vector<8x128xf32>
    %9 = math.floor %8 : vector<8x128xf32>
    %cst_1 = arith.constant 6.400000e+01 : f32
    %10 = vector.broadcast %cst_1 : f32 to vector<8x128xf32>
    %11 = arith.mulf %9, %10 : vector<8x128xf32>
    %12 = arith.subf %6, %11 : vector<8x128xf32>
    %c16_i32 = arith.constant 16 : i32
    %13 = arith.muli %arg0, %c16_i32 : i32
    %14 = arith.sitofp %13 : i32 to f32
    %cst_2 = arith.constant 1.500000e+01 : f32
    %15 = arith.addf %14, %cst_2 : f32
    %16 = vector.broadcast %14 : f32 to vector<8x128xf32>
    %17 = arith.addf %9, %16 : vector<8x128xf32>
    %cst_3 = arith.constant 1.000000e-01 : f32
    %18 = vector.broadcast %cst_3 : f32 to vector<8x128xf32>
    %cst_4 = arith.constant 2.000000e-01 : f32
    %19 = vector.broadcast %cst_4 : f32 to vector<8x128xf32>
    %cst_5 = arith.constant 3.000000e-01 : f32
    %20 = vector.broadcast %cst_5 : f32 to vector<8x128xf32>
    %cst_6 = arith.constant 1.000000e+02 : f32
    %21 = vector.broadcast %cst_6 : f32 to vector<8x128xf32>
    %cst_7 = arith.constant 0.000000e+00 : f32
    %22 = vector.broadcast %cst_7 : f32 to vector<8x128xf32>
    %c0 = arith.constant 0 : index
    %23 = memref.load %arg1[%c0] : memref<1xi32, #tpu.memory_space<smem>>
    %c0_i32 = arith.constant 0 : i32
    %24 = arith.subi %23, %c0_i32 : i32
    %25 = arith.addi %c0_i32, %24 : i32
    %c1_i32 = arith.constant 1 : i32
    %26:5 = scf.for %arg6 = %c0_i32 to %25 step %c1_i32 iter_args(%arg7 = %18, %arg8 = %19, %arg9 = %20, %arg10 = %21, %arg11 = %22) -> (vector<8x128xf32>, vector<8x128xf32>, vector<8x128xf32>, vector<8x128xf32>, vector<8x128xf32>)  : i32 {
      %c0_i32_19 = arith.constant 0 : i32
      %38 = arith.addi %c0_i32_19, %arg6 : i32
      %39 = arith.index_cast %38 : i32 to index
      %40 = memref.load %arg2[%39] : memref<1152xf32, #tpu.memory_space<smem>>
      %c128_i32 = arith.constant 128 : i32
      %41 = arith.addi %c128_i32, %arg6 : i32
      %42 = arith.index_cast %41 : i32 to index
      %43 = memref.load %arg2[%42] : memref<1152xf32, #tpu.memory_space<smem>>
      %c256_i32 = arith.constant 256 : i32
      %44 = arith.addi %c256_i32, %arg6 : i32
      %45 = arith.index_cast %44 : i32 to index
      %46 = memref.load %arg2[%45] : memref<1152xf32, #tpu.memory_space<smem>>
      %c384_i32 = arith.constant 384 : i32
      %47 = arith.addi %c384_i32, %arg6 : i32
      %48 = arith.index_cast %47 : i32 to index
      %49 = memref.load %arg2[%48] : memref<1152xf32, #tpu.memory_space<smem>>
      %c512_i32 = arith.constant 512 : i32
      %50 = arith.addi %c512_i32, %arg6 : i32
      %51 = arith.index_cast %50 : i32 to index
      %52 = memref.load %arg2[%51] : memref<1152xf32, #tpu.memory_space<smem>>
      %c768_i32 = arith.constant 768 : i32
      %53 = arith.addi %c768_i32, %arg6 : i32
      %54 = arith.index_cast %53 : i32 to index
      %55 = memref.load %arg2[%54] : memref<1152xf32, #tpu.memory_space<smem>>
      %c896_i32 = arith.constant 896 : i32
      %56 = arith.addi %c896_i32, %arg6 : i32
      %57 = arith.index_cast %56 : i32 to index
      %58 = memref.load %arg2[%57] : memref<1152xf32, #tpu.memory_space<smem>>
      %c1024_i32 = arith.constant 1024 : i32
      %59 = arith.addi %c1024_i32, %arg6 : i32
      %60 = arith.index_cast %59 : i32 to index
      %61 = memref.load %arg2[%60] : memref<1152xf32, #tpu.memory_space<smem>>
      %62 = arith.addf %43, %49 : f32
      %63 = arith.cmpf oge, %62, %14 : f32
      %64 = arith.subf %43, %49 : f32
      %65 = arith.cmpf ole, %64, %15 : f32
      %66 = arith.andi %63, %65 : i1
      %67 = arith.extui %66 : i1 to i32
      %c0_i32_20 = arith.constant 0 : i32
      %68 = arith.cmpi ne, %67, %c0_i32_20 : i32
      %69:5 = scf.if %68 -> (vector<8x128xf32>, vector<8x128xf32>, vector<8x128xf32>, vector<8x128xf32>, vector<8x128xf32>) {
        %70 = vector.broadcast %40 : f32 to vector<8x128xf32>
        %71 = arith.subf %12, %70 : vector<8x128xf32>
        %72 = vector.broadcast %43 : f32 to vector<8x128xf32>
        %73 = arith.subf %17, %72 : vector<8x128xf32>
        %74 = arith.mulf %71, %71 : vector<8x128xf32>
        %75 = arith.mulf %73, %73 : vector<8x128xf32>
        %76 = arith.addf %74, %75 : vector<8x128xf32>
        %77 = arith.mulf %49, %49 : f32
        %78 = vector.broadcast %77 : f32 to vector<8x128xf32>
        %79 = arith.cmpf ole, %76, %78 : vector<8x128xf32>
        %80 = math.sqrt %76 : vector<8x128xf32>
        %cst_21 = arith.constant -5.000000e-01 : f32
        %81 = vector.broadcast %cst_21 : f32 to vector<8x128xf32>
        %82 = arith.mulf %80, %81 : vector<8x128xf32>
        %83 = math.exp %82 : vector<8x128xf32>
        %84 = vector.broadcast %52 : f32 to vector<8x128xf32>
        %85 = arith.mulf %84, %83 : vector<8x128xf32>
        %cst_22 = arith.constant 1.000000e+00 : f32
        %86 = vector.broadcast %cst_22 : f32 to vector<8x128xf32>
        %87 = arith.subf %86, %arg11 : vector<8x128xf32>
        %88 = arith.mulf %85, %87 : vector<8x128xf32>
        %cst_23 = arith.constant 0.000000e+00 : f32
        %89 = vector.broadcast %cst_23 : f32 to vector<8x128xf32>
        %90 = arith.select %79, %88, %89 : vector<8x128xi1>, vector<8x128xf32>
        %cst_24 = arith.constant 1.000000e+00 : f32
        %91 = vector.broadcast %cst_24 : f32 to vector<8x128xf32>
        %92 = arith.subf %91, %90 : vector<8x128xf32>
        %93 = arith.mulf %arg7, %92 : vector<8x128xf32>
        %94 = vector.broadcast %55 : f32 to vector<8x128xf32>
        %95 = arith.mulf %94, %90 : vector<8x128xf32>
        %96 = arith.addf %93, %95 : vector<8x128xf32>
        %97 = arith.mulf %arg8, %92 : vector<8x128xf32>
        %98 = vector.broadcast %58 : f32 to vector<8x128xf32>
        %99 = arith.mulf %98, %90 : vector<8x128xf32>
        %100 = arith.addf %97, %99 : vector<8x128xf32>
        %101 = arith.mulf %arg9, %92 : vector<8x128xf32>
        %102 = vector.broadcast %61 : f32 to vector<8x128xf32>
        %103 = arith.mulf %102, %90 : vector<8x128xf32>
        %104 = arith.addf %101, %103 : vector<8x128xf32>
        %105 = arith.mulf %arg10, %92 : vector<8x128xf32>
        %106 = vector.broadcast %46 : f32 to vector<8x128xf32>
        %107 = arith.mulf %106, %90 : vector<8x128xf32>
        %108 = arith.addf %105, %107 : vector<8x128xf32>
        %109 = arith.addf %arg11, %90 : vector<8x128xf32>
        scf.yield %96, %100, %104, %108, %109 : vector<8x128xf32>, vector<8x128xf32>, vector<8x128xf32>, vector<8x128xf32>, vector<8x128xf32>
      } else {
        scf.yield %arg7, %arg8, %arg9, %arg10, %arg11 : vector<8x128xf32>, vector<8x128xf32>, vector<8x128xf32>, vector<8x128xf32>, vector<8x128xf32>
      }
      scf.yield %69#0, %69#1, %69#2, %69#3, %69#4 : vector<8x128xf32>, vector<8x128xf32>, vector<8x128xf32>, vector<8x128xf32>, vector<8x128xf32>
    }
    %c0_8 = arith.constant 0 : index
    %c0_9 = arith.constant 0 : index
    %c0_10 = arith.constant 0 : index
    %27 = vector.load %arg3[%c0_8, %c0_9, %c0_10] : memref<3x8x128xf32, #tpu.memory_space<vmem>>, vector<1x8x128xf32>
    %28 = vector.shape_cast %27 : vector<1x8x128xf32> to vector<8x128xf32>
    %29 = vector.shape_cast %26#0 : vector<8x128xf32> to vector<1x8x128xf32>
    tpu.vector_store %arg3[%c0_8, %c0_9, %c0_10], %29 {strides = array<i32>} : memref<3x8x128xf32, #tpu.memory_space<vmem>>, vector<1x8x128xf32>,
    %c1 = arith.constant 1 : index
    %c0_11 = arith.constant 0 : index
    %c0_12 = arith.constant 0 : index
    %30 = vector.load %arg3[%c1, %c0_11, %c0_12] : memref<3x8x128xf32, #tpu.memory_space<vmem>>, vector<1x8x128xf32>
    %31 = vector.shape_cast %30 : vector<1x8x128xf32> to vector<8x128xf32>
    %32 = vector.shape_cast %26#1 : vector<8x128xf32> to vector<1x8x128xf32>
    tpu.vector_store %arg3[%c1, %c0_11, %c0_12], %32 {strides = array<i32>} : memref<3x8x128xf32, #tpu.memory_space<vmem>>, vector<1x8x128xf32>,
    %c2 = arith.constant 2 : index
    %c0_13 = arith.constant 0 : index
    %c0_14 = arith.constant 0 : index
    %33 = vector.load %arg3[%c2, %c0_13, %c0_14] : memref<3x8x128xf32, #tpu.memory_space<vmem>>, vector<1x8x128xf32>
    %34 = vector.shape_cast %33 : vector<1x8x128xf32> to vector<8x128xf32>
    %35 = vector.shape_cast %26#2 : vector<8x128xf32> to vector<1x8x128xf32>
    tpu.vector_store %arg3[%c2, %c0_13, %c0_14], %35 {strides = array<i32>} : memref<3x8x128xf32, #tpu.memory_space<vmem>>, vector<1x8x128xf32>,
    %c0_15 = arith.constant 0 : index
    %c0_16 = arith.constant 0 : index
    %36 = vector.load %arg4[%c0_15, %c0_16] : memref<8x128xf32, #tpu.memory_space<vmem>>, vector<8x128xf32>
    tpu.vector_store %arg4[%c0_15, %c0_16], %26#3 {strides = array<i32>} : memref<8x128xf32, #tpu.memory_space<vmem>>, vector<8x128xf32>,
    %c0_17 = arith.constant 0 : index
    %c0_18 = arith.constant 0 : index
    %37 = vector.load %arg5[%c0_17, %c0_18] : memref<8x128xf32, #tpu.memory_space<vmem>>, vector<8x128xf32>
    tpu.vector_store %arg5[%c0_17, %c0_18], %26#4 {strides = array<i32>} : memref<8x128xf32, #tpu.memory_space<vmem>>, vector<8x128xf32>,
    return
  }
  func.func @transform_0(%arg0: i32) -> i32 {
    %c0_i32 = arith.constant 0 : i32
    %c0_i32_0 = arith.constant 0 : i32
    return %c0_i32 : i32
  }
  func.func @transform_1(%arg0: i32) -> i32 {
    %c0_i32 = arith.constant 0 : i32
    %c0_i32_0 = arith.constant 0 : i32
    return %c0_i32 : i32
  }
  func.func @transform_2(%arg0: i32) -> (i32, i32, i32) {
    %c0_i32 = arith.constant 0 : i32
    %c0_i32_0 = arith.constant 0 : i32
    %c0_i32_1 = arith.constant 0 : i32
    return %c0_i32, %arg0, %c0_i32_0 : i32, i32, i32
  }
  func.func @transform_3(%arg0: i32) -> (i32, i32) {
    %c0_i32 = arith.constant 0 : i32
    %c0_i32_0 = arith.constant 0 : i32
    return %arg0, %c0_i32 : i32, i32
  }
  func.func @transform_4(%arg0: i32) -> (i32, i32) {
    %c0_i32 = arith.constant 0 : i32
    %c0_i32_0 = arith.constant 0 : i32
    return %arg0, %c0_i32 : i32, i32
  }
}

</mosaic_0001>

<bundles_post_ra>
// kernel: differentiable_voxel_rasterizer.2
= control target key start
LH: loop header
LB: loop body
LE: loop exit
PB: predicated region body
PF: predicated region fallthrough
CT: control target
= control target key end

     0   :  { %11 = vsyncpa [#allocation3], 0  ;;  %s490_s0 = inlined_call_operand.vmem [shape: f32[3,1,128], index: 0, kind: input, shape index: {}]   ;;  %s491_s1 = inlined_call_operand.vmem [shape: f32[1,128], index: 1, kind: input, shape index: {}]   ;;  %s492_s2 = inlined_call_operand.vmem [shape: f32[1,128], index: 2, kind: input, shape index: {}]   ;;  %s493_s3 = inlined_call_operand.vmem [shape: f32[3,1,128], index: 3, kind: input, shape index: {}]   ;;  %s494_s4 = inlined_call_operand.vmem [shape: f32[4,4], index: 4, kind: input, shape index: {}]   ;;  %s495_s5 = inlined_call_operand.vmem [shape: f32[3,3], index: 5, kind: input, shape index: {}]   ;;  %s496_s6 = inlined_call_operand.vmem [shape: f32[9,1,128], index: 6, kind: output, shape index: {}]  }
   0x1   :  { %s26_s23 = sshll.u32 %s494_s4, 4  ;;  %s27_s23 = int_to_ptr.vmem [resolvable:$true] %s26_s23 }
   0x2   :  { %12 = vsyncpa [#allocation5], 0  ;;  %s35_s26 = sshll.u32 %s495_s5, 4  ;;  %s337_s27 = smov [#allocation2]   ;;  %s36_s26 = int_to_ptr.vmem [resolvable:$true] %s35_s26 }
   0x3   :  { %29 = dma.vmem_to_smem %s27_s23, 64, %s337_s27, [#allocation3]  }
   0x4   :  { %s338_s28 = smov [#allocation4]  }
   0x5   :  { %38 = dma.vmem_to_smem %s36_s26, 64, %s338_s28, [#allocation5]  }
   0x6   :  { %333 = dma.done.wait [#allocation3], 64  }
   0x7   :  { %334 = vsyncadd [#allocation3], 4294967232 }
   0x8   :  { %335 = dma.done.wait [#allocation5], 64  }
   0x9   :  { %336 = vsyncadd [#allocation5], 4294967232 }
   0xa   :  { %47 = sfence }
   0xb   :  { %v196_v0 = vld [vmem:[%s492_s2] sm:$0x1]  ;;  %s384_s4 = sld [smem:[#allocation2]]  ;;  %v258_v6 = vld [vmem:[%s490_s0 + $0x1] sm:$0x1] }
   0xc   :  { %v198_v1 = vand.u32 2147483647, %v196_v0  ;;  %s386_s5 = sld [smem:[#allocation2 + $0x1]]  ;;  %v48_v5 = vld [vmem:[%s490_s0] sm:$0x1]  ;;  %v197_v26 = vmax.f32 %v196_v0, 0.0 }
   0xd   :  { %s388_s7 = sld [smem:[#allocation2 + $0x80]]  ;;  %v259_v8 = vld [vmem:[%s490_s0 + $0x2] sm:$0x1]  ;;  %v429_v40 = vld [vmem:[%s491_s1] sm:$0x1] }
   0xe   :  { %v199_v2 = vsub.f32 0.0, %v198_v1  ;;  %s390_s8 = sld [smem:[#allocation2 + $0x81]] }
   0xf   :  { %s271_s9 = sld [smem:[#allocation2 + $0x180]] }
  0x10   :  { %v200_v3 = vmul.f32 1.442695, %v199_v2  ;;  %s272_s10 = sld [smem:[#allocation2 + $0x181]] }
  0x11   :  { %s273_s11 = sld [smem:[#allocation2 + $0x182]]  ;;  %v54_v17 = vstv %s384_s4 }
  0x12   :  { %297 = vpow2.f32 %v200_v3  ;;  %s274_s12 = sld [smem:[#allocation2 + $0x183]]  ;;  %v57_v18 = vstv %s386_s5  ;;  %v55_v28 = vmul.f32 %v54_v17, %v48_v5 }
  0x13   :  { %s395_s2 = sld [smem:[#allocation2 + $0x100]]  ;;  %v68_v19 = vstv %s388_s7  ;;  %v58_v29 = vmul.f32 %v258_v6, %v57_v18 }
  0x14   :  { %s400_s17 = sld [smem:[#allocation2 + $0x101]]  ;;  %v71_v22 = vstv %s390_s8  ;;  %v69_v31 = vmul.f32 %v68_v19, %v48_v5 }
  0x15   :  { %v96_v9 = vstv %s271_s9  ;;  %s405_s20 = sld [smem:[#allocation2 + $0x2]]  ;;  %v72_v32 = vmul.f32 %v258_v6, %v71_v22  ;;  %v59_v38 = vadd.f32 %v58_v29, %v55_v28 }
  0x16   :  { %v97_v10 = vmul.f32 %v96_v9, %v48_v5  ;;  %v99_v11 = vstv %s272_s10  ;;  %s407_s21 = sld [smem:[#allocation2 + $0x82]] }
  0x17   :  { %v100_v12 = vmul.f32 %v258_v6, %v99_v11  ;;  %v103_v13 = vstv %s273_s11  ;;  %s409_s22 = sld [smem:[#allocation2 + $0x102]]  ;;  %v73_v42 = vadd.f32 %v72_v32, %v69_v31 }
  0x18   :  { %v298_v4 = vpop.eup %297  ;;  %v104_v14 = vmul.f32 %v259_v8, %v103_v13  ;;  %v107_v16 = vstv %s274_s12  ;;  %s418_s0 = sld [smem:[#allocation2 + $0x3]] }
  0x19   :  { %v202_v7 = vadd.f32 1.0, %v298_v4  ;;  %v101_v15 = vadd.f32 %v100_v12, %v97_v10  ;;  %v82_v23 = vstv %s395_s2  ;;  %s421_s23 = sld [smem:[#allocation2 + $0x83]] }
  0x1a   :  { %v85_v24 = vstv %s400_s17  ;;  %v83_v33 = vmul.f32 %v82_v23, %v48_v5  ;;  %s424_s24 = sld [smem:[#allocation2 + $0x103]] }
  0x1b   :  { %299 = vlog2.f32 %v202_v7  ;;  %v105_v20 = vadd.f32 %v104_v14, %v101_v15  ;;  %v61_v30 = vstv %s405_s20  ;;  %v86_v34 = vmul.f32 %v258_v6, %v85_v24  ;;  %s433_s27 = sld [smem:[#allocation4 + $0x100]]  ;;  %v241_v15 = vld [vmem:[%s493_s3] sm:$0x3]  }
  0x1c   :  { %v75_v35 = vstv %s407_s21  ;;  %v62_v39 = vmul.f32 %v259_v8, %v61_v30  ;;  %s435_s1 = sld [smem:[#allocation4 + $0x101]]  ;;  %289 = vst [vmem:[%s496_s6 + $0x6] sm:$0x3] %v241_v15  }
  0x1d   :  { %v108_v25 = vadd.f32 %v107_v16, %v105_v20  ;;  %v89_v36 = vstv %s409_s22  ;;  %v76_v43 = vmul.f32 %v259_v8, %v75_v35  ;;  %v87_v44 = vadd.f32 %v86_v34, %v83_v33  ;;  %s437_s28 = sld [smem:[#allocation4 + $0x102]]  ;;  %v292_v16 = vld [vmem:[%s493_s3 + $0x2] sm:$0x1] }
  0x1e   :  { %v90_v45 = vmul.f32 %v259_v8, %v89_v36  ;;  %v63_v48 = vadd.f32 %v62_v39, %v59_v38  ;;  %v65_v49 = vstv %s418_s0  ;;  %s441_s29 = sld [smem:[#allocation4]]  ;;  %293 = vst [vmem:[%s496_s6 + $0x8] sm:$0x1] %v292_v16 }
  0x1f   :  { %301 = vrcp.f32 %v108_v25  ;;  %v77_v52 = vadd.f32 %v76_v43, %v73_v42  ;;  %vm114_vm0 = vweird.f32 %v108_v25  ;;  %v120_v54 = vand.u32 2147483648, %v108_v25  ;;  %s275_s30 = sld [smem:[#allocation4 + $0x1]] }
  0x20   :  { %v91_v53 = vadd.f32 %v90_v45, %v87_v44  ;;  %v118_v56 = vand.u32 2147483647, %v108_v25  ;;  %v79_v57 = vstv %s421_s23  ;;  %v93_v58 = vstv %s424_s24  ;;  %s277_s4 = sld [smem:[#allocation4 + $0x80]] }
  0x21   :  { %v300_v21 = vpop.eup %299  ;;  %v66_v60 = vadd.f32 %v65_v49, %v63_v48  ;;  %v121_v61 = vor.u32 1.1754944e-38, %v120_v54  ;;  %v80_v62 = vadd.f32 %v79_v57, %v77_v52  ;;  %v150_v4 = vstv %s433_s27  ;;  %s278_s8 = sld [smem:[#allocation4 + $0x81]] }
  0x22   :  { %v204_v27 = vmul.f32 0.6931472, %v300_v21  ;;  %v94_v63 = vadd.f32 %v93_v58, %v91_v53  ;;  %vm119_vm3 = vcmp.eq.f32.partialorder %v118_v56, 8.507059e+37  ;;  %v153_v5 = vstv %s435_s1  ;;  %s452_s9 = sld [smem:[#allocation4 + $0x2]] }
  0x23   :  { %v157_v10 = vstv %s437_s28  ;;  %s279_s15 = sld [smem:[#allocation4 + $0x82]] }
  0x24   :  { %v205_v37 = vadd.f32 %v204_v27, %v197_v26  ;;  %v128_v21 = vstv %s441_s29 }
  0x25   :  { %v302_v47 = vpop.eup %301  ;;  %v131_v22 = vstv %s275_s30  ;;  %v178_v48 = vmul.f32 %v429_v40, %v128_v21 }
  0x26   :  { %v206_v41 = vsub.f32 0.0, %v205_v37  ;;  %v110_v50 = vmul.f32 %v302_v47, %v108_v25  ;;  %vm115_vm1 = vweird.f32 %v302_v47  ;;  %v139_v23 = vstv %s277_s4 }
  0x27   :  { %vm116_vm2 = vmor %vm114_vm0, %vm115_vm1  ;;  %v142_v24 = vstv %s278_s8 }
  0x28   :  { %v207_v46 = vmul.f32 %v206_v41, %v429_v40  ;;  %v111_v55 = vsub.f32 1.0, %v110_v50  ;;  %v135_v28 = vstv %s452_s9 }
  0x29   :  { %v146_v31 = vstv %s279_s15 }
  0x2a   :  { %v208_v51 = vmul.f32 1.442695, %v207_v46  ;;  %v112_v59 = vmul.f32 %v302_v47, %v111_v55 }
  0x2c   :  { %303 = vpow2.f32 %v208_v51  ;;  %v113_v0 = vadd.f32 %v302_v47, %v112_v59 }
  0x2e   :  { %v117_v2 = vsel %vm116_vm2, %v302_v47, %v113_v0 }
  0x2f   :  { %v122_v3 = vsel %vm119_vm3, %v121_v61, %v117_v2  ;;  %v339_v2 = vmov 0.0  }
  0x30   :  { %v124_v7 = vmul.f32 %v122_v3, %v66_v60  ;;  %v125_v8 = vmul.f32 %v122_v3, %v80_v62  ;;  %v445_v9 = vmul.f32 %v122_v3, %v94_v63 }
  0x32   :  { %v304_v1 = vpop.eup %303  ;;  %v151_v12 = vmul.f32 %v150_v4, %v124_v7  ;;  %284 = vst [vmem:[%s496_s6 + $0x2] sm:$0x1] %v445_v9  ;;  %v154_v13 = vmul.f32 %v153_v5, %v125_v8  ;;  %v158_v14 = vmul.f32 %v157_v10, %v445_v9  ;;  %v179_v17 = vmax.f32 %v445_v9, 0.1 }
  0x33   :  { %v210_v6 = vsub.f32 1.0, %v304_v1  ;;  %v129_v26 = vmul.f32 %v128_v21, %v124_v7  ;;  %v132_v27 = vmul.f32 %v131_v22, %v125_v8  ;;  %v140_v29 = vmul.f32 %v139_v23, %v124_v7 }
  0x34   :  { %v155_v19 = vadd.f32 %v154_v13, %v151_v12  ;;  %305 = vrcp.f32 %v179_v17  ;;  %v143_v30 = vmul.f32 %v142_v24, %v125_v8  ;;  %v191_v33 = vand.u32 2147483648, %v179_v17 }
  0x35   :  { %v211_v11 = vmax.f32 %v210_v6, 0.0  ;;  %vm185_vm4 = vweird.f32 %v179_v17  ;;  %v189_v36 = vand.u32 2147483647, %v179_v17  ;;  %v133_v37 = vadd.f32 %v132_v27, %v129_v26 }
  0x36   :  { %v159_v20 = vadd.f32 %v158_v14, %v155_v19  ;;  %v136_v38 = vmul.f32 %v135_v28, %v445_v9  ;;  %v147_v41 = vmul.f32 %v146_v31, %v445_v9  ;;  %v144_v43 = vadd.f32 %v143_v30, %v140_v29 }
  0x37   :  { %v212_v18 = vmin.f32 %v211_v11, 1.0  ;;  %v192_v47 = vor.u32 1.1754944e-38, %v191_v33  ;;  %vm190_vm9 = vcmp.eq.f32.partialorder %v189_v36, 8.507059e+37  ;;  %vm213_vm12 = vcmp.gt.f32.partialorder %v445_v9, 0.1 }
  0x38   :  { %307 = vrcp.f32 %v159_v20  ;;  %vm165_vm6 = vweird.f32 %v159_v20  ;;  %v171_v42 = vand.u32 2147483648, %v159_v20  ;;  %v169_v46 = vand.u32 2147483647, %v159_v20 }
  0x39   :  { %286 = vst [vmem:[%s496_s6 + $0x4] sm:$0x1] %v212_v18  ;;  %v137_v51 = vadd.f32 %v136_v38, %v133_v37  ;;  %v148_v55 = vadd.f32 %v147_v41, %v144_v43  ;;  %vm214_vm13 = vcmp.lt.f32.partialorder %v445_v9, 100.0 }
  0x3a   :  { %v306_v25 = vpop.eup %305  ;;  %v172_v52 = vor.u32 1.1754944e-38, %v171_v42  ;;  %vm170_vm11 = vcmp.eq.f32.partialorder %v169_v46, 8.507059e+37  ;;  %vm215_vm14 = vmand %vm213_vm12, %vm214_vm13 }
  0x3b   :  { %v181_v32 = vmul.f32 %v306_v25, %v179_v17  ;;  %vm186_vm5 = vweird.f32 %v306_v25 }
  0x3c   :  { %vm187_vm8 = vmor %vm185_vm4, %vm186_vm5 }
  0x3d   :  { %v182_v35 = vsub.f32 1.0, %v181_v32 }
  0x3e   :  { %v308_v34 = vpop.eup %307 }
  0x3f   :  { %v161_v39 = vmul.f32 %v308_v34, %v159_v20  ;;  %v183_v44 = vmul.f32 %v306_v25, %v182_v35  ;;  %vm166_vm7 = vweird.f32 %v308_v34 }
  0x40   :  { %vm167_vm10 = vmor %vm165_vm6, %vm166_vm7 }
  0x41   :  { %v162_v45 = vsub.f32 1.0, %v161_v39  ;;  %v184_v49 = vadd.f32 %v306_v25, %v183_v44 }
  0x43   :  { %v163_v50 = vmul.f32 %v308_v34, %v162_v45  ;;  %v188_v53 = vsel %vm187_vm8, %v306_v25, %v184_v49 }
  0x44   :  { %v193_v56 = vsel %vm190_vm9, %v192_v47, %v188_v53 }
  0x45   :  { %v164_v54 = vadd.f32 %v308_v34, %v163_v50  ;;  %v194_v57 = vmul.f32 %v193_v56, %v178_v48 }
  0x47   :  { %v168_v58 = vsel %vm167_vm10, %v308_v34, %v164_v54  ;;  %v195_v60 = vmul.f32 0.5, %v194_v57 }
  0x48   :  { %v173_v59 = vsel %vm170_vm11, %v172_v52, %v168_v58 }
  0x49   :  { %v175_v40 = vmul.f32 %v173_v59, %v137_v51  ;;  %v176_v61 = vmul.f32 %v173_v59, %v148_v55  ;;  %285 = vst [vmem:[%s496_s6 + $0x3] sm:$0x1] %v195_v60 }
  0x4b   :  { %228 = vst [vmem:[%s496_s6] sm:$0x1] %v175_v40  ;;  %v216_v62 = vadd.f32 %v194_v57, %v175_v40  ;;  %v219_v63 = vsub.f32 %v175_v40, %v194_v57  ;;  %v222_v0 = vadd.f32 %v194_v57, %v176_v61  ;;  %v225_v1 = vsub.f32 %v176_v61, %v194_v57 }
  0x4c   :  { %283 = vst [vmem:[%s496_s6 + $0x1] sm:$0x1] %v176_v61 }
  0x4d   :  { %vm217_vm15 = vcmp.ge.f32.partialorder %v216_v62, 0.0  ;;  %vm220_vm0 = vcmp.lt.f32.partialorder %v219_v63, 64.0  ;;  %vm223_vm1 = vcmp.ge.f32.partialorder %v222_v0, 0.0  ;;  %vm226_vm3 = vcmp.lt.f32.partialorder %v225_v1, 64.0 }
  0x4e   :  { %vm218_vm2 = vmand %vm215_vm14, %vm217_vm15 }
  0x4f   :  { %vm221_vm4 = vmand %vm218_vm2, %vm220_vm0 }
  0x50   :  { %vm224_vm5 = vmand %vm221_vm4, %vm223_vm1 }
  0x51   :  { %vm227_vm6 = vmand %vm224_vm5, %vm226_vm3 }
  0x52   :  { %v287_v3 = vsel %vm227_vm6, 1.0, %v339_v2 }
  0x53   :  { %288 = vst [vmem:[%s496_s6 + $0x5] sm:$0x1] %v287_v3 }
  0x54   :  { %256 = vsyncpa [#allocation3], 1 }
  0x55   :  { %257 = vsyncpa [#allocation5], 1 }

// kernel: differentiable_voxel_rasterizer.3
= control target key start
LH: loop header
LB: loop body
LE: loop exit
PB: predicated region body
PF: predicated region fallthrough
CT: control target
= control target key end

     0   :  { %s1110_s0 = inlined_call_operand.<no memory space> [shape: s32[1], index: 0, kind: input, shape index: {}]   ;;  %s1111_s1 = inlined_call_operand.vmem [shape: f32[1152], index: 1, kind: input, shape index: {}]   ;;  %s1112_s2 = inlined_call_operand.vmem [shape: f32[3,32,128], index: 2, kind: output, shape index: {0}]   ;;  %s1113_s3 = inlined_call_operand.vmem [shape: f32[32,128], index: 3, kind: output, shape index: {1}]   ;;  %s1114_s4 = inlined_call_operand.vmem [shape: f32[32,128], index: 4, kind: output, shape index: {2}]  }
   0x1   :  { %10 = sst [smem:[#allocation2]] %s1110_s0 }
   0x2   :  { %11 = vsyncpa [#allocation4], 0  ;;  %s870_s17 = smov 0   ;;  %s872_s18 = smov 0  }
   0x3   :  { %s874_s19 = smov 0  }
   0x4 LB: > { %s883_s0 = sadd.s32 4294967295, %s794_s19   ;;  %s885_s20 = sadd.s32 1, %s794_s19   ;;  %s794_s19 = sphi %s874_s19, %s1133_s19   ;;  %s790_s18 = sphi %s872_s18, %s1132_s18   ;;  %s786_s17 = sphi %s870_s17, %s1131_s17  }
   0x5   : > { %s63_s21 = ssub.s32 %s794_s19, %s885_s20  ;;  %s66_s22 = sadd.s32 1, %s790_s18 }
   0x6   : > { %p64_p0 = scmp.eq.s32.totalorder %s63_s21, 0  ;;  %p76_p1 = scmp.ne.s32.totalorder %s790_s18, %s786_s17 }
   0x7   : > { %p77_p2 = scmp.eq.s32.totalorder %s883_s0, 3  ;;  %p519_p3 = scmp.ge.s32.totalorder %s794_s19, 1 }
   0x8   : > { %s893_s23 = scalar_select %p64_p0, %s790_s18, %s66_s22  }
   0x9   : > { %p895_p4 = por %p77_p2, %p76_p1  ;;  %p142_p5 = scmp.lt.s32.totalorder %s794_s19, 5 }
   0xa   : > { %p582_p6 = scmp.eq.s32.totalorder %s883_s0, 0  ;;  %s157_s27 = sshll.u32 %s1111_s1, 4  ;;  %s158_s27 = int_to_ptr.vmem [resolvable:$true] %s157_s27 }
   0xb   : > { %p143_p7 = pnand %p519_p3, %p142_p5  ;;  %s840_s28 = smov [#allocation3]  }
   0xd   : > { %p578_p8 = pneg %p143_p7  ;;  %170 = sbr.rel (%p143_p7) target bundleno = 120 (0x78), region = 28 }
   0xf   : > { %p579_p9 = pnand %p582_p6, %p578_p8 }
  0x11   : > { %581 = dma.vmem_to_smem (!%p579_p9), %s158_s27, 144, %s840_s28, [#allocation4]  }
  0x12   : > { %781 = dma.done.wait (%p582_p6), [#allocation4], 144  }
  0x13   : > { %783 = vsyncadd (%p582_p6), [#allocation4], 4294967152 }
  0x14   : > { %177 = sfence }
  0x15   : > { %s185_s29 = sand.u32 1, %s786_s17   ;;  %p200_p10 = scmp.lt.s32.totalorder %s883_s0, 3  ;;  %v208_v0 = vlaneseq  ;;  %v841_v1 = vmov 64.0   ;;  %v935_v20 = vmov 0.0   ;;  %v937_v21 = vmov 100.0  }
  0x16   : > { %s532_s30 = smul.u32 24, %s185_s29  ;;  %703 = vrcp.f32 %v841_v1  ;;  %s525_s5 = sshll.u32 %s883_s0, 4  ;;  %v939_v22 = vmov 0.3   ;;  %v941_v23 = vmov 0.2  }
  0x17   : > { %s201_s6 = scalar_select %p200_p10, %s883_s0, 3  ;;  %v209_v2 = vshrl.u32 %v208_v0, 7  ;;  %v212_v4 = vand.u32 127, %v208_v0  ;;  %v943_v24 = vmov 0.1  }
  0x18   : > { %s907_s7 = scvt.s32.f32 %s525_s5  ;;  %s909_s9 = sld [smem:[#allocation2]] }
  0x19   : > { %s523_s8 = sshll.u32 %s201_s6, 3  ;;  %v210_v3 = vcvt.s32.f32 %v209_v2  ;;  %v213_v7 = vcvt.s32.f32 %v212_v4  ;;  %s932_s17 = scalar_lea.vmem [#allocation5], %s532_s30 }
  0x1a   : > { %s914_s12 = scalar_lea.vmem %s1113_s3, %s523_s8  ;;  %s919_s15 = scalar_lea.vmem %s1114_s4, %s523_s8  ;;  %v230_v15 = vstv %s907_s7 }
  0x1b   : > { %s229_s16 = sadd.f32 15.0, %s907_s7  ;;  %v214_v8 = vmul.f32 128.0, %v210_v3 }
  0x1c   : > { %v704_v5 = vpop.eup %703 }
  0x1d   : > { %v217_v6 = vmul.f32 64.0, %v704_v5  ;;  %v922_v11 = vadd.f32 %v214_v8, %v213_v7  ;;  %vm221_vm0 = vweird.f32 %v704_v5 }
  0x1e   : > { %p526_p11 = scmp.le.s32.totalorder %s909_s9, 0 }
  0x1f   : > { %v218_v9 = vsub.f32 1.0, %v217_v6  ;;  %s955_s19 = smov (!%p526_p11), 0  }
  0x21   : > { %v219_v10 = vmul.f32 %v704_v5, %v218_v9 }
  0x23   : > { %v220_v12 = vadd.f32 %v704_v5, %v219_v10 }
  0x25   : > { %v222_v13 = vsel %vm221_vm0, %v704_v5, %v220_v12 }
  0x26   : > { %v223_v14 = vmul.f32 %v222_v13, %v922_v11 }
  0x28   : > { %v224_v16 = vfloor.f32 %v223_v14  ;;  %463 = sbr.rel (%p526_p11) target bundleno = 109 (0x6d), region = 133 }
  0x2a   : > { %v926_v17 = vmul.f32 64.0, %v224_v16  ;;  %v928_v18 = vadd.f32 %v230_v15, %v224_v16 }
  0x2c   : > { %v226_v19 = vsub.f32 %v922_v11, %v926_v17 }
  0x2d   : > { %v945_v25 = vmov 0.0   ;;  %v947_v26 = vmov 100.0   ;;  %v949_v27 = vmov 0.3   ;;  %v951_v28 = vmov 0.2  }
  0x2e   : > { %v953_v29 = vmov 0.1  }
  0x2f LB: >> { %s244_s21 = sld [smem:[#allocation3 + %s818_s19]]  ;;  %s245_s22 = sadd.s32 128, %s818_s19  ;;  %v294_v51 = vsub.f32 1.0, %v798_v25  ;;  %s818_s19 = sphi %s955_s19, %s236_s19   ;;  %v814_v29 = vphi %v953_v29, %v1126_v29   ;;  %v810_v28 = vphi %v951_v28, %v1125_v28   ;;  %v806_v27 = vphi %v949_v27, %v1124_v27   ;;  %v802_v26 = vphi %v947_v26, %v1123_v26   ;;  %v798_v25 = vphi %v945_v25, %v1122_v25  }
  0x30   : >> { %s246_s25 = sld [smem:[#allocation3 + %s245_s22]]  ;;  %s249_s26 = sadd.s32 384, %s818_s19 }
  0x31   : >> { %s978_s27 = sld [smem:[#allocation3 + %s249_s26]]  ;;  %s251_s6 = sadd.s32 512, %s818_s19 }
  0x32   : >> { %s252_s8 = sld [smem:[#allocation3 + %s251_s6]]  ;;  %s253_s10 = sadd.s32 768, %s818_s19 }
  0x33   : >> { %s255_s11 = sadd.s32 896, %s818_s19  ;;  %s257_s13 = sadd.s32 1024, %s818_s19 }
  0x34   : >> { %s247_s14 = sadd.s32 256, %s818_s19  ;;  %s256_s22 = sld [smem:[#allocation3 + %s255_s11]] }
  0x35   : >> { %v267_v30 = vstv %s244_s21  ;;  %s254_s21 = sld [smem:[#allocation3 + %s253_s10]]  ;;  %s236_s19 = sadd.s32 1, %s818_s19  }
  0x36   : >> { %v268_v31 = vsub.f32 %v226_v19, %v267_v30  ;;  %v269_v32 = vstv %s246_s25  ;;  %p235_p1 = scmp.ge.s32.totalorder %s236_s19, %s909_s9 }
  0x37   : >> { %v270_v33 = vsub.f32 %v928_v18, %v269_v32  ;;  %s259_s28 = sadd.f32 %s978_s27, %s246_s25  ;;  %s274_s26 = smul.f32 %s978_s27, %s978_s27 }
  0x38   : >> { %v271_v34 = vmul.f32 %v268_v31, %v268_v31  ;;  %s261_s29 = ssub.f32 %s246_s25, %s978_s27  ;;  %v292_v49 = vstv %s252_s8 }
  0x39   : >> { %v272_v35 = vmul.f32 %v270_v33, %v270_v33  ;;  %p987_p12 = scmp.ge.f32.partialorder %s259_s28, %s907_s7  ;;  %s258_s25 = sld [smem:[#allocation3 + %s257_s13]]  ;;  %v275_v50 = vstv %s274_s26 }
  0x3a   : >> { %p993_p13 = scmp.le.f32.partialorder %s261_s29, %s229_s16  ;;  %s248_s28 = sld [smem:[#allocation3 + %s247_s14]]  ;;  %v303_v57 = vstv %s256_s22 }
  0x3b   : >> { %v273_v36 = vadd.f32 %v272_v35, %v271_v34  ;;  %v299_v56 = vstv %s254_s21 }
  0x3c   : >> { %p263_p0 = pnand %p993_p13, %p987_p12 }
  0x3d   : >> { %705 = vrsqrt.f32 %v273_v36  ;;  %vm284_vm1 = vcmp.eq.f32.partialorder %v273_v36, inf  ;;  %v287_v43 = vand.u32 2147483648, %v273_v36  ;;  %vm286_vm2 = vcmp.eq.f32.partialorder %v273_v36, 0.0 }
  0x3e   : >> { %s584_s29 = scalar_select %p263_p0, 0, 1  ;;  %vm276_vm3 = vcmp.le.f32.partialorder %v273_v36, %v275_v50 }
  0x3f   : >> { %s558_s6 = scalar_select %p263_p0, 1, 0  ;;  %v307_v58 = vstv %s258_s25 }
  0x40   : >> { %v539_v54 = vstv %s584_s29  ;;  %v311_v59 = vstv %s248_s28 }
  0x41   : >> { %v559_v60 = vstv %s558_s6  ;;  %vm1019_vm4 = vcmp.ne.s32.totalorder %v539_v54, 0 }
  0x42   : >> { %vm1024_vm5 = vcmp.ne.s32.totalorder %v559_v60, 0 }
  0x43   : >> { %v706_v37 = vpop.eup %705 }
  0x44   : >> { %v278_v38 = vmul.f32 %v706_v37, %v273_v36 }
  0x46   : >> { %v279_v39 = vmul.f32 %v706_v37, %v278_v38 }
  0x48   : >> { %v280_v40 = vmul.f32 0.5, %v279_v39 }
  0x4a   : >> { %v281_v41 = vsub.f32 1.5, %v280_v40 }
  0x4c   : >> { %v282_v42 = vmul.f32 %v706_v37, %v281_v41 }
  0x4e   : >> { %v283_v44 = vmul.f32 %v282_v42, %v273_v36 }
  0x50   : >> { %v285_v45 = vsel %vm284_vm1, %v273_v36, %v283_v44 }
  0x51   : >> { %v288_v46 = vsel %vm286_vm2, %v287_v43, %v285_v45 }
  0x52   : >> { %v289_v47 = vmul.f32 -0.5, %v288_v46 }
  0x54   : >> { %v290_v48 = vmul.f32 1.442695, %v289_v47 }
  0x56   : >> { %707 = vpow2.f32 %v290_v48 }
  0x5c   : >> { %v708_v52 = vpop.eup %707 }
  0x5d   : >> { %v293_v53 = vmul.f32 %v708_v52, %v292_v49 }
  0x5f   : >> { %v295_v55 = vmul.f32 %v294_v51, %v293_v53 }
  0x61   : >> { %v296_v61 = vsel %vm276_vm3, %v295_v55, 0.0 }
  0x62   : >> { %v297_v63 = vsub.f32 1.0, %v296_v61  ;;  %v300_v0 = vmul.f32 %v299_v56, %v296_v61  ;;  %v304_v1 = vmul.f32 %v303_v57, %v296_v61  ;;  %v308_v2 = vmul.f32 %v307_v58, %v296_v61 }
  0x63   : >> { %v312_v3 = vmul.f32 %v311_v59, %v296_v61  ;;  %v314_v4 = vadd.f32 %v798_v25, %v296_v61 }
  0x64   : >> { %v298_v6 = vmul.f32 %v814_v29, %v297_v63  ;;  %v302_v7 = vmul.f32 %v810_v28, %v297_v63  ;;  %v306_v8 = vmul.f32 %v806_v27, %v297_v63  ;;  %v310_v9 = vmul.f32 %v802_v26, %v297_v63 }
  0x65   : >> { %v557_v10 = vsel %vm1019_vm4, %v314_v4, 0 }
  0x66   : >> { %v301_v12 = vadd.f32 %v300_v0, %v298_v6  ;;  %v305_v13 = vadd.f32 %v304_v1, %v302_v7  ;;  %v309_v14 = vadd.f32 %v308_v2, %v306_v8  ;;  %v313_v15 = vadd.f32 %v312_v3, %v310_v9 }
  0x67   : >> { %v577_v16 = vsel %vm1024_vm5, %v798_v25, %v557_v10   ;;  %238 = sbr.rel (!%p235_p1) target bundleno = 47 (0x2f), region = 139 }
  0x68   : >> { %v541_v20 = vsel %vm1019_vm4, %v301_v12, 0  ;;  %v545_v21 = vsel %vm1019_vm4, %v305_v13, 0  ;;  %v549_v22 = vsel %vm1019_vm4, %v309_v14, 0  ;;  %v553_v23 = vsel %vm1019_vm4, %v313_v15, 0 }
  0x69   : >> { %v561_v24 = vsel %vm1024_vm5, %v814_v29, %v541_v20   ;;  %v565_v30 = vsel %vm1024_vm5, %v810_v28, %v545_v21   ;;  %v569_v31 = vsel %vm1024_vm5, %v806_v27, %v549_v22   ;;  %v573_v32 = vsel %vm1024_vm5, %v802_v26, %v553_v23  }
  0x6a   : >> { %v1122_v25 = vmov %v577_v16  ;;  %v1123_v26 = vmov %v573_v32  ;;  %v1124_v27 = vmov %v569_v31  ;;  %v1125_v28 = vmov %v565_v30 }
  0x6b   : >> { %v1126_v29 = vmov %v561_v24  ;;  %v1127_v20 = vmov (%p235_p1), %v577_v16  ;;  %v1128_v21 = vmov (%p235_p1), %v573_v32  ;;  %v1129_v22 = vmov (%p235_p1), %v569_v31 }
  0x6c   : > { %v1130_v23 = vmov %v565_v30 }
  0x6d PF: > { %328 = vst [vmem:[%s932_s17] sm:$0xff] %v838_v24  ;;  %349 = sbr.rel (!%p895_p4) target bundleno = 120 (0x78), region = 51  ;;  %s529_s7 = sshll.u32 (%p895_p4), %s883_s0, 3  ;;  %v838_v24 = vphi %v943_v24, %v561_v24   ;;  %v834_v23 = vphi %v941_v23, %v1130_v23   ;;  %v830_v22 = vphi %v939_v22, %v1129_v22   ;;  %v826_v21 = vphi %v937_v21, %v1128_v21   ;;  %v822_v20 = vphi %v935_v20, %v1127_v20  }
  0x6e   : > { %527 = vst [vmem:[%s932_s17 + $0x8] sm:$0xff] %v834_v23  ;;  %s351_s19 = scalar_lea.vmem (%p895_p4), %s1112_s2, %s529_s7 }
  0x6f   : > { %528 = vst [vmem:[%s932_s17 + $0x10] sm:$0xff] %v830_v22 }
  0x70   : > { %333 = vst [vmem:[%s914_s12] sm:$0xff] %v826_v21 }
  0x71   : > { %334 = vst [vmem:[%s919_s15] sm:$0xff] %v822_v20 }
  0x74   : > { %v384_v11 = vld [vmem:[%s932_s17] sm:$0xff] }
  0x75   : > { %v386_v17 = vld [vmem:[%s932_s17 + $0x8] sm:$0xff]  ;;  %385 = vst [vmem:[%s351_s19] sm:$0xff] %v384_v11 }
  0x76   : > { %v388_v18 = vld [vmem:[%s932_s17 + $0x10] sm:$0xff]  ;;  %387 = vst [vmem:[%s351_s19 + $0x20] sm:$0xff] %v386_v17 }
  0x77   : > { %389 = vst [vmem:[%s351_s19 + $0x40] sm:$0xff] %v388_v18 }
  0x78 PF: > { %p14_p2 = scmp.ge.s32.totalorder %s885_s20, 6   ;;  %s1131_s17 = smov %s790_s18 }
  0x79   : > { %s1132_s18 = smov %s893_s23  ;;  %s1133_s19 = smov %s885_s20 }
  0x7a   :  { %16 = sbr.rel (!%p14_p2) target bundleno = 4 (0x4), region = 150 }
  0x7f   :  { %425 = vsyncpa [#allocation4], 1 }
  0x80   :  { %427 = vsyncpa [#allocation4 + $0x1], 1 }

</bundles_post_ra>
